<compile_context>
chip_gen: v7x
topology: tpu7x:2x2x1
jax: 0.10.0
libtpu: 0.0.40
codegen_flags: <defaults>
</compile_context>

<pallas_src>
import functools

import jax
import jax.numpy as jnp
from jax.experimental import pallas as pl
from jax.experimental.pallas import tpu as pltpu

# ----------------------------- sizes ---------------------------------------
D = 3      # point / deformation dimension
H = 32     # MLP hidden width
S = 1      # scalar (SDF) output width
N = 128    # number of points (must be a multiple of 128 for the lane axis)

# Packed-weight slab row layout (all rows x 128 lanes, f32):
#   rows   0: 64  -> fused [deform|correct] layer-1:  W1 (64,3) in cols 0:3, b1 in col 3
#   rows  64: 72  -> fused block-diagonal layer-2:    W2 (8,64) in cols 0:64, b2 in col 64
#   rows  72:104  -> orig layer-1:                    W1 (32,3) in cols 0:3, b1 in col 3
#   rows 104:112  -> orig layer-2 (padded to 8 rows): W2 (8,32) in cols 0:32, b2 in col 32
WROWS = 112


# ----------------------------- kernel ---------------------------------------
def _deformation_kernel(x_ref, w_ref, out_ref):
    # x_ref: (8, N)  rows 0:3 hold x^T, rows 3:8 are zero padding
    # w_ref: (WROWS, 128) packed weights (see layout above)
    # out_ref: (8, N) slab: row0=out, rows1:4=delta_x, row4=delta_s, rows5:8=0
    x = x_ref[0:3, :]                                   # (3, N)
    x0 = x_ref[0:1, :]
    x1 = x_ref[1:2, :]
    x2 = x_ref[2:3, :]

    # ---- fused deform|correct layer 1 (K=3 contraction on the VPU) ----
    h = (w_ref[0:64, 0:1] * x0
         + w_ref[0:64, 1:2] * x1
         + w_ref[0:64, 2:3] * x2
         + w_ref[0:64, 3:4])                            # (64, N)
    h = jnp.maximum(h, 0.0)

    # ---- fused block-diagonal layer 2 on the MXU: (8,64) @ (64,N) ----
    y = jnp.dot(w_ref[64:72, 0:64], h,
                preferred_element_type=jnp.float32) + w_ref[64:72, 64:65]
    y = jnp.tanh(y)                                     # (8, N); rows 4:8 are tanh(0)=0

    x_deform = y[0:3, :]                                # (3, N)
    delta_s = y[3:4, :]                                 # (1, N)
    delta_x = x_deform - x                              # (3, N)

    # ---- orig layer 1 on x_deform (K=3 on the VPU) ----
    ho = (w_ref[72:104, 0:1] * x_deform[0:1, :]
          + w_ref[72:104, 1:2] * x_deform[1:2, :]
          + w_ref[72:104, 2:3] * x_deform[2:3, :]
          + w_ref[72:104, 3:4])                         # (32, N)
    ho = jnp.maximum(ho, 0.0)

    # ---- orig layer 2 on the MXU: (8,32) @ (32,N); only row 0 is real ----
    s8 = jnp.dot(w_ref[104:112, 0:32], ho,
                 preferred_element_type=jnp.float32) + w_ref[104:112, 32:33]
    s = s8[0:1, :]                                      # (1, N)

    out = s + delta_s                                   # (1, N)

    # ---- single dense (8, N) output slab ----
    out_ref[0:1, :] = out
    out_ref[1:4, :] = delta_x
    out_ref[4:5, :] = delta_s
    out_ref[5:8, :] = jnp.zeros_like(delta_x)


# ----------------------------- wrapper ---------------------------------------
def _pack_weights(params):
    (d_w1, d_b1, d_w2, d_b2,
     c_w1, c_b1, c_w2, c_b2,
     o_w1, o_b1, o_w2, o_b2) = params
    W = jnp.zeros((WROWS, 128), jnp.float32)
    # fused [deform|correct] layer 1
    W = W.at[0:32, 0:3].set(d_w1.T)
    W = W.at[32:64, 0:3].set(c_w1.T)
    W = W.at[0:32, 3:4].set(d_b1.T)
    W = W.at[32:64, 3:4].set(c_b1.T)
    # fused block-diagonal layer 2
    W = W.at[64:67, 0:32].set(d_w2.T)
    W = W.at[67:68, 32:64].set(c_w2.T)
    W = W.at[64:67, 64:65].set(d_b2.T)
    W = W.at[67:68, 64:65].set(c_b2.T)
    # orig layer 1
    W = W.at[72:104, 0:3].set(o_w1.T)
    W = W.at[72:104, 3:4].set(o_b1.T)
    # orig layer 2 (padded to 8 output rows)
    W = W.at[104:105, 0:32].set(o_w2.T)
    W = W.at[104:105, 32:33].set(o_b2.T)
    return W


@functools.partial(jax.jit, static_argnames=())
def deformation_wrapper_forward(x, params):
    """Returns (out, delta_x, delta_s) — the return_both=True path."""
    n, d = x.shape
    assert d == D and n % 128 == 0
    x = x.astype(jnp.float32)

    # Transposed, lane-dense packing: (8, N) with x^T in the first 3 rows.
    x_pack = jnp.zeros((8, n), jnp.float32).at[0:3, :].set(x.T)
    w_pack = _pack_weights(params)

    grid_spec = pltpu.PrefetchScalarGridSpec(
        num_scalar_prefetch=0,
        grid=(1,),
        in_specs=[
            pl.BlockSpec((8, n), lambda i: (0, 0)),
            pl.BlockSpec((WROWS, 128), lambda i: (0, 0)),
        ],
        out_specs=pl.BlockSpec((8, n), lambda i: (0, 0)),
    )

    slab = pl.pallas_call(
        _deformation_kernel,
        out_shape=jax.ShapeDtypeStruct((8, n), jnp.float32),
        grid_spec=grid_spec,
        compiler_params=pltpu.CompilerParams(
            dimension_semantics=("arbitrary",),
        ),
    )(x_pack, w_pack)

    out = slab[0:1, :].T.astype(x.dtype)        # (N, 1)
    delta_x = slab[1:4, :].T.astype(x.dtype)    # (N, 3)
    delta_s = slab[4:5, :].T.astype(x.dtype)    # (N, 1)
    return out, delta_x, delta_s


# ----------------------------- reference (pure JAX) --------------------------
def _mlp(x, w1, b1, w2, b2):
    h = jnp.maximum(x @ w1 + b1, 0.0)
    return h @ w2 + b2


def reference_forward(x, params):
    (d_w1, d_b1, d_w2, d_b2,
     c_w1, c_b1, c_w2, c_b2,
     o_w1, o_b1, o_w2, o_b2) = params
    x_deform = jnp.tanh(_mlp(x, d_w1, d_b1, d_w2, d_b2))
    delta_x = x_deform - x
    delta_s = jnp.tanh(_mlp(x, c_w1, c_b1, c_w2, c_b2))
    out = _mlp(x_deform, o_w1, o_b1, o_w2, o_b2) + delta_s
    return out, delta_x, delta_s


# ----------------------------- main ------------------------------------------
def _init_params(key):
    ks = jax.random.split(key, 12)

    def lin(kw, kb, fan_in, fan_out):
        w = jax.random.normal(kw, (fan_in, fan_out), jnp.float32) * (1.0 / jnp.sqrt(fan_in))
        b = jax.random.normal(kb, (1, fan_out), jnp.float32) * 0.01
        return w, b

    d_w1, d_b1 = lin(ks[0], ks[1], D, H)
    d_w2, d_b2 = lin(ks[2], ks[3], H, D)
    c_w1, c_b1 = lin(ks[4], ks[5], D, H)
    c_w2, c_b2 = lin(ks[6], ks[7], H, S)
    o_w1, o_b1 = lin(ks[8], ks[9], D, H)
    o_w2, o_b2 = lin(ks[10], ks[11], H, S)
    return (d_w1, d_b1, d_w2, d_b2,
            c_w1, c_b1, c_w2, c_b2,
            o_w1, o_b1, o_w2, o_b2)


if __name__ == "__main__":
    key = jax.random.PRNGKey(0)
    kx, kp = jax.random.split(key)
    x = jax.random.normal(kx, (N, D), jnp.float32)
    params = _init_params(kp)

    out, delta_x, delta_s = deformation_wrapper_forward(x, params)
    jax.block_until_ready((out, delta_x, delta_s))

    ref_out, ref_dx, ref_ds = reference_forward(x, params)
    assert jnp.allclose(out, ref_out, atol=1e-5, rtol=1e-5)
    assert jnp.allclose(delta_x, ref_dx, atol=1e-5, rtol=1e-5)
    assert jnp.allclose(delta_s, ref_ds, atol=1e-5, rtol=1e-5)

    print("KERNEL_OK")
</pallas_src>

<mosaic_0001>
module attributes {stable_mosaic.version = 11 : i64} {
  func.func @_deformation_kernel(%arg0: i32, %arg1: memref<8x128xf32, #tpu.memory_space<vmem>>, %arg2: memref<112x128xf32, #tpu.memory_space<vmem>>, %arg3: memref<8x128xf32, #tpu.memory_space<vmem>>) attributes {dimension_semantics = [#tpu.dimension_semantics<arbitrary>], iteration_bounds = array<i64: 1>, scalar_prefetch = 0 : i64, scratch_operands = 0 : i64, tpu.core_type = #tpu.core_type<tc>, window_params = [{pipeline_mode = #tpu.pipeline_mode<synchronous>, transform_indices = @transform_0, window_bounds = array<i64: 8, 128>}, {pipeline_mode = #tpu.pipeline_mode<synchronous>, transform_indices = @transform_1, window_bounds = array<i64: 112, 128>}, {pipeline_mode = #tpu.pipeline_mode<synchronous>, transform_indices = @transform_2, window_bounds = array<i64: 8, 128>}]} {
    %c0 = arith.constant 0 : index
    %c0_0 = arith.constant 0 : index
    %0 = vector.load %arg1[%c0, %c0_0] : memref<8x128xf32, #tpu.memory_space<vmem>>, vector<3x128xf32>
    %c0_1 = arith.constant 0 : index
    %c0_2 = arith.constant 0 : index
    %1 = vector.load %arg1[%c0_1, %c0_2] : memref<8x128xf32, #tpu.memory_space<vmem>>, vector<1x128xf32>
    %c1 = arith.constant 1 : index
    %c0_3 = arith.constant 0 : index
    %2 = vector.load %arg1[%c1, %c0_3] : memref<8x128xf32, #tpu.memory_space<vmem>>, vector<1x128xf32>
    %c2 = arith.constant 2 : index
    %c0_4 = arith.constant 0 : index
    %3 = vector.load %arg1[%c2, %c0_4] : memref<8x128xf32, #tpu.memory_space<vmem>>, vector<1x128xf32>
    %c0_5 = arith.constant 0 : index
    %c0_6 = arith.constant 0 : index
    %4 = vector.load %arg2[%c0_5, %c0_6] : memref<112x128xf32, #tpu.memory_space<vmem>>, vector<64x1xf32>
    %5 = vector.broadcast %4 : vector<64x1xf32> to vector<64x128xf32>
    %6 = vector.broadcast %1 : vector<1x128xf32> to vector<64x128xf32>
    %7 = arith.mulf %5, %6 : vector<64x128xf32>
    %c0_7 = arith.constant 0 : index
    %c1_8 = arith.constant 1 : index
    %8 = vector.load %arg2[%c0_7, %c1_8] : memref<112x128xf32, #tpu.memory_space<vmem>>, vector<64x1xf32>
    %9 = vector.broadcast %8 : vector<64x1xf32> to vector<64x128xf32>
    %10 = vector.broadcast %2 : vector<1x128xf32> to vector<64x128xf32>
    %11 = arith.mulf %9, %10 : vector<64x128xf32>
    %12 = arith.addf %7, %11 : vector<64x128xf32>
    %c0_9 = arith.constant 0 : index
    %c2_10 = arith.constant 2 : index
    %13 = vector.load %arg2[%c0_9, %c2_10] : memref<112x128xf32, #tpu.memory_space<vmem>>, vector<64x1xf32>
    %14 = vector.broadcast %13 : vector<64x1xf32> to vector<64x128xf32>
    %15 = vector.broadcast %3 : vector<1x128xf32> to vector<64x128xf32>
    %16 = arith.mulf %14, %15 : vector<64x128xf32>
    %17 = arith.addf %12, %16 : vector<64x128xf32>
    %c0_11 = arith.constant 0 : index
    %c3 = arith.constant 3 : index
    %18 = vector.load %arg2[%c0_11, %c3] : memref<112x128xf32, #tpu.memory_space<vmem>>, vector<64x1xf32>
    %19 = vector.broadcast %18 : vector<64x1xf32> to vector<64x128xf32>
    %20 = arith.addf %17, %19 : vector<64x128xf32>
    %cst = arith.constant 0.000000e+00 : f32
    %21 = vector.broadcast %cst : f32 to vector<64x128xf32>
    %22 = arith.maximumf %20, %21 : vector<64x128xf32>
    %c64 = arith.constant 64 : index
    %c0_12 = arith.constant 0 : index
    %23 = vector.load %arg2[%c64, %c0_12] : memref<112x128xf32, #tpu.memory_space<vmem>>, vector<8x64xf32>
    %cst_13 = arith.constant dense<0.000000e+00> : vector<8x128xf32>
    %24 = tpu.matmul %23, %22, %cst_13 {dimension_numbers = #tpu.dot_dimension_numbers<[1], [0], [0], [1], [0, 0, 1, 1], [], []>} : vector<8x64xf32>, vector<64x128xf32>, vector<8x128xf32> -> vector<8x128xf32>
    %c64_14 = arith.constant 64 : index
    %c64_15 = arith.constant 64 : index
    %25 = vector.load %arg2[%c64_14, %c64_15] : memref<112x128xf32, #tpu.memory_space<vmem>>, vector<8x1xf32>
    %26 = vector.broadcast %25 : vector<8x1xf32> to vector<8x128xf32>
    %27 = arith.addf %24, %26 : vector<8x128xf32>
    %28 = math.tanh %27 : vector<8x128xf32>
    %29 = vector.extract_strided_slice %28 {offsets = [0, 0], sizes = [3, 128], strides = [1, 1]} : vector<8x128xf32> to vector<3x128xf32>
    %30 = vector.extract_strided_slice %28 {offsets = [3, 0], sizes = [1, 128], strides = [1, 1]} : vector<8x128xf32> to vector<1x128xf32>
    %31 = arith.subf %29, %0 : vector<3x128xf32>
    %c72 = arith.constant 72 : index
    %c0_16 = arith.constant 0 : index
    %32 = vector.load %arg2[%c72, %c0_16] : memref<112x128xf32, #tpu.memory_space<vmem>>, vector<32x1xf32>
    %33 = vector.extract_strided_slice %29 {offsets = [0, 0], sizes = [1, 128], strides = [1, 1]} : vector<3x128xf32> to vector<1x128xf32>
    %34 = vector.broadcast %32 : vector<32x1xf32> to vector<32x128xf32>
    %35 = vector.broadcast %33 : vector<1x128xf32> to vector<32x128xf32>
    %36 = arith.mulf %34, %35 : vector<32x128xf32>
    %c72_17 = arith.constant 72 : index
    %c1_18 = arith.constant 1 : index
    %37 = vector.load %arg2[%c72_17, %c1_18] : memref<112x128xf32, #tpu.memory_space<vmem>>, vector<32x1xf32>
    %38 = vector.extract_strided_slice %29 {offsets = [1, 0], sizes = [1, 128], strides = [1, 1]} : vector<3x128xf32> to vector<1x128xf32>
    %39 = vector.broadcast %37 : vector<32x1xf32> to vector<32x128xf32>
    %40 = vector.broadcast %38 : vector<1x128xf32> to vector<32x128xf32>
    %41 = arith.mulf %39, %40 : vector<32x128xf32>
    %42 = arith.addf %36, %41 : vector<32x128xf32>
    %c72_19 = arith.constant 72 : index
    %c2_20 = arith.constant 2 : index
    %43 = vector.load %arg2[%c72_19, %c2_20] : memref<112x128xf32, #tpu.memory_space<vmem>>, vector<32x1xf32>
    %44 = vector.extract_strided_slice %29 {offsets = [2, 0], sizes = [1, 128], strides = [1, 1]} : vector<3x128xf32> to vector<1x128xf32>
    %45 = vector.broadcast %43 : vector<32x1xf32> to vector<32x128xf32>
    %46 = vector.broadcast %44 : vector<1x128xf32> to vector<32x128xf32>
    %47 = arith.mulf %45, %46 : vector<32x128xf32>
    %48 = arith.addf %42, %47 : vector<32x128xf32>
    %c72_21 = arith.constant 72 : index
    %c3_22 = arith.constant 3 : index
    %49 = vector.load %arg2[%c72_21, %c3_22] : memref<112x128xf32, #tpu.memory_space<vmem>>, vector<32x1xf32>
    %50 = vector.broadcast %49 : vector<32x1xf32> to vector<32x128xf32>
    %51 = arith.addf %48, %50 : vector<32x128xf32>
    %cst_23 = arith.constant 0.000000e+00 : f32
    %52 = vector.broadcast %cst_23 : f32 to vector<32x128xf32>
    %53 = arith.maximumf %51, %52 : vector<32x128xf32>
    %c104 = arith.constant 104 : index
    %c0_24 = arith.constant 0 : index
    %54 = vector.load %arg2[%c104, %c0_24] : memref<112x128xf32, #tpu.memory_space<vmem>>, vector<8x32xf32>
    %cst_25 = arith.constant dense<0.000000e+00> : vector<8x128xf32>
    %55 = tpu.matmul %54, %53, %cst_25 {dimension_numbers = #tpu.dot_dimension_numbers<[1], [0], [0], [1], [0, 0, 1, 1], [], []>} : vector<8x32xf32>, vector<32x128xf32>, vector<8x128xf32> -> vector<8x128xf32>
    %c104_26 = arith.constant 104 : index
    %c32 = arith.constant 32 : index
    %56 = vector.load %arg2[%c104_26, %c32] : memref<112x128xf32, #tpu.memory_space<vmem>>, vector<8x1xf32>
    %57 = vector.broadcast %56 : vector<8x1xf32> to vector<8x128xf32>
    %58 = arith.addf %55, %57 : vector<8x128xf32>
    %59 = vector.extract_strided_slice %58 {offsets = [0, 0], sizes = [1, 128], strides = [1, 1]} : vector<8x128xf32> to vector<1x128xf32>
    %60 = arith.addf %59, %30 : vector<1x128xf32>
    %c0_27 = arith.constant 0 : index
    %c0_28 = arith.constant 0 : index
    %61 = vector.load %arg3[%c0_27, %c0_28] : memref<8x128xf32, #tpu.memory_space<vmem>>, vector<1x128xf32>
    tpu.vector_store %arg3[%c0_27, %c0_28], %60 {strides = array<i32>} : memref<8x128xf32, #tpu.memory_space<vmem>>, vector<1x128xf32>,
    %c1_29 = arith.constant 1 : index
    %c0_30 = arith.constant 0 : index
    %62 = vector.load %arg3[%c1_29, %c0_30] : memref<8x128xf32, #tpu.memory_space<vmem>>, vector<3x128xf32>
    tpu.vector_store %arg3[%c1_29, %c0_30], %31 {strides = array<i32>} : memref<8x128xf32, #tpu.memory_space<vmem>>, vector<3x128xf32>,
    %c4 = arith.constant 4 : index
    %c0_31 = arith.constant 0 : index
    %63 = vector.load %arg3[%c4, %c0_31] : memref<8x128xf32, #tpu.memory_space<vmem>>, vector<1x128xf32>
    tpu.vector_store %arg3[%c4, %c0_31], %30 {strides = array<i32>} : memref<8x128xf32, #tpu.memory_space<vmem>>, vector<1x128xf32>,
    %cst_32 = arith.constant 0.000000e+00 : f32
    %64 = vector.broadcast %cst_32 : f32 to vector<3x128xf32>
    %c5 = arith.constant 5 : index
    %c0_33 = arith.constant 0 : index
    %65 = vector.load %arg3[%c5, %c0_33] : memref<8x128xf32, #tpu.memory_space<vmem>>, vector<3x128xf32>
    tpu.vector_store %arg3[%c5, %c0_33], %64 {strides = array<i32>} : memref<8x128xf32, #tpu.memory_space<vmem>>, vector<3x128xf32>,
    return
  }
  func.func @transform_0(%arg0: i32) -> (i32, i32) {
    %c0_i32 = arith.constant 0 : i32
    %c0_i32_0 = arith.constant 0 : i32
    %c0_i32_1 = arith.constant 0 : i32
    return %c0_i32, %c0_i32_0 : i32, i32
  }
  func.func @transform_1(%arg0: i32) -> (i32, i32) {
    %c0_i32 = arith.constant 0 : i32
    %c0_i32_0 = arith.constant 0 : i32
    %c0_i32_1 = arith.constant 0 : i32
    return %c0_i32, %c0_i32_0 : i32, i32
  }
  func.func @transform_2(%arg0: i32) -> (i32, i32) {
    %c0_i32 = arith.constant 0 : i32
    %c0_i32_0 = arith.constant 0 : i32
    %c0_i32_1 = arith.constant 0 : i32
    return %c0_i32, %c0_i32_0 : i32, i32
  }
}

</mosaic_0001>

<bundles_post_ra>
// kernel: deformation_wrapper_forward.1
= control target key start
LH: loop header
LB: loop body
LE: loop exit
PB: predicated region body
PF: predicated region fallthrough
CT: control target
= control target key end

     0   :  { %v621_v0 = vmov 3   ;;  %v622_v1 = vmov 1   ;;  %v623_v4 = vmov 2   ;;  %v624_v7 = vmov 0   ;;  %s787_s1 = inlined_call_operand.vmem [shape: f32[112,128], index: 1, kind: input, shape index: {}]   ;;  %s788_s2 = inlined_call_operand.vmem [shape: f32[8,128], index: 2, kind: output, shape index: {}]   ;;  %s789_s0 = inlined_call_operand.vmem [shape: f32[8,128], index: 0, kind: input, shape index: {}]  }
   0x1   :  { %593 = vset.pattern.permute.xlu0 %v621_v0  ;;  %587 = vset.pattern.permute.xlu1 %v622_v1  ;;  %v16_v2 = vld [vmem:[%s787_s1 + $0x8] sm:$0xff]  ;;  %v15_v3 = vld [vmem:[%s787_s1] sm:$0xff]  ;;  %v17_v5 = vld [vmem:[%s787_s1 + $0x10] sm:$0xff]  ;;  %v625_v12 = vmov 0.0|0.0   ;;  %vm626_vm0 = vmmov 0   ;;  %v627_v13 = vmov 0.0  }
   0x2   :  { %184 = vperm.xlu0 %593, %v16_v2   ;;  %76 = vperm.xlu1 %587, %v15_v3   ;;  %v20_v6 = vld [vmem:[%s787_s1 + $0x28] sm:$0xff]  ;;  %v18_v8 = vld [vmem:[%s787_s1 + $0x18] sm:$0xff]  ;;  %v21_v9 = vld [vmem:[%s787_s1 + $0x30] sm:$0xff]  ;;  %506 = vst [vmem:[%s788_s2 + $0x5] sm:$0x7] %v627_v13  ;;  %v628_v16 = vmov 64  }
   0x3   :  { %v19_v10 = vld [vmem:[%s787_s1 + $0x20] sm:$0xff]  ;;  %v22_v11 = vld [vmem:[%s787_s1 + $0x38] sm:$0xff]  ;;  %560 = vmatprep.subr.bf16.mxu0 %v625_v12  ;;  %572 = vmatprep.subr.bf16.mxu1 %v625_v12  ;;  %v308_v14 = vld [vmem:[%s787_s1 + $0x48] sm:$0xff]  ;;  %vm233_vm1 = vcmask 523264   ;;  %vm426_vm2 = vcmask 261120  }
   0x4   :  { %546 = vmatprep.mubr.msk.f32.mxu0 %vm626_vm0, %v627_v13  ;;  %557 = vmatprep.mubr.msk.f32.mxu1 %vm626_vm0, %v627_v13  ;;  %v700_v15 = vld [vmem:[%s787_s1 + $0x40] sm:$0xff]  ;;  %v310_v17 = vld [vmem:[%s787_s1 + $0x58] sm:$0xff]  ;;  %v309_v18 = vld [vmem:[%s787_s1 + $0x50] sm:$0xff] }
   0x5   :  { %v311_v19 = vld [vmem:[%s787_s1 + $0x60] sm:$0xff] }
   0x6   :  { %594 = vset.pattern.permute.xlu0 %v623_v4  ;;  %80 = vperm.xlu1 %587, %v16_v2   ;;  %v726_v30 = vld [vmem:[%s789_s0 + $0x1] ss:$0 sm:$0xff]  ;;  %v731_v31 = vld [vmem:[%s789_s0] ss:$0 sm:$0xff]  ;;  %v737_v34 = vld [vmem:[%s789_s0 + $0x2] ss:$0 sm:$0xff] }
   0x7   :  { %128 = vperm.xlu0 %594, %v15_v3  }
   0xa   :  { %588 = vset.pattern.permute.xlu1 %v623_v4 }
   0xb   :  { %136 = vperm.xlu0 %594, %v17_v5   ;;  %132 = vperm.xlu1 %588, %v16_v2  }
   0xf   :  { %148 = vperm.xlu0 %594, %v20_v6   ;;  %589 = vset.pattern.permute.xlu1 %v624_v7 }
  0x10   :  { %35 = vperm.xlu1 %589, %v17_v5  }
  0x13   :  { %598 = vset.pattern.permute.xlu0 %v624_v7 }
  0x14   :  { %25 = vperm.xlu0 %598, %v15_v3   ;;  %590 = vset.pattern.permute.xlu1 %v622_v1 }
  0x15   :  { %84 = vperm.xlu1 %590, %v17_v5  }
  0x18   :  { %30 = vperm.xlu0 %598, %v16_v2  }
  0x19   :  { %88 = vperm.xlu1 %590, %v18_v8  }
  0x1c   :  { %40 = vperm.xlu0 %598, %v18_v8  }
  0x1d   :  { %591 = vset.pattern.permute.xlu1 %v623_v4 }
  0x1e   :  { %140 = vperm.xlu1 %591, %v18_v8  }
  0x20   :  { %55 = vperm.xlu0 %598, %v21_v9  }
  0x22   :  { %592 = vset.pattern.permute.xlu1 %v621_v0 }
  0x23   :  { %180 = vperm.xlu1 %592, %v15_v3  }
  0x24   :  { %600 = vset.pattern.permute.xlu0 %v622_v1 }
  0x25   :  { %92 = vperm.xlu0 %600, %v19_v10  }
  0x27   :  { %595 = vset.pattern.permute.xlu1 %v624_v7 }
  0x28   :  { %45 = vperm.xlu1 %595, %v19_v10  }
  0x29   :  { %104 = vperm.xlu0 %600, %v22_v11  }
  0x2c   :  { %50 = vperm.xlu1 %595, %v20_v6  }
  0x2d   :  { %604 = vset.pattern.permute.xlu0 %v621_v0 }
  0x2e   :  { %196 = vperm.xlu0 %604, %v19_v10  }
  0x30   :  { %596 = vset.pattern.permute.xlu1 %v622_v1 }
  0x31   :  { %96 = vperm.xlu1 %596, %v20_v6  }
  0x32   :  { %208 = vperm.xlu0 %604, %v22_v11  }
  0x35   :  { %597 = vset.pattern.permute.xlu1 %v623_v4 }
  0x36   :  { %144 = vperm.xlu1 %597, %v19_v10   ;;  %607 = vset.pattern.permute.xlu0 %v624_v7 }
  0x37   :  { %314 = vperm.xlu0 %607, %v308_v14  }
  0x3a   :  { %599 = vset.pattern.permute.xlu1 %v621_v0 }
  0x3b   :  { %188 = vperm.xlu1 %599, %v17_v5   ;;  %324 = vperm.xlu0 %607, %v310_v17  }
  0x3f   :  { %192 = vperm.xlu1 %599, %v18_v8   ;;  %611 = vset.pattern.permute.xlu0 %v622_v1 }
  0x40   :  { %345 = vperm.xlu0 %611, %v309_v18  }
  0x43   :  { %601 = vset.pattern.permute.xlu1 %v624_v7 }
  0x44   :  { %60 = vperm.xlu1 %601, %v22_v11   ;;  %353 = vperm.xlu0 %611, %v311_v19  }
  0x48   :  { %602 = vset.pattern.permute.xlu1 %v622_v1  ;;  %615 = vset.pattern.permute.xlu0 %v621_v0 }
  0x49   :  { %100 = vperm.xlu1 %602, %v21_v9   ;;  %397 = vperm.xlu0 %615, %v308_v14  }
  0x4d   :  { %603 = vset.pattern.permute.xlu1 %v623_v4  ;;  %409 = vperm.xlu0 %615, %v311_v19  }
  0x4e   :  { %152 = vperm.xlu1 %603, %v21_v9  }
  0x52   :  { %156 = vperm.xlu1 %603, %v22_v11  }
  0x56   :  { %605 = vset.pattern.permute.xlu1 %v621_v0 }
  0x57   :  { %200 = vperm.xlu1 %605, %v20_v6  }
  0x5b   :  { %204 = vperm.xlu1 %605, %v21_v9  }
  0x5f   :  { %606 = vset.pattern.permute.xlu1 %v628_v16 }
  0x60   :  { %230 = vperm.xlu1 %606, %v700_v15  }
  0x64   :  { %608 = vset.pattern.permute.xlu1 %v624_v7 }
  0x65   :  { %319 = vperm.xlu1 %608, %v309_v18  }
  0x69   :  { %609 = vset.pattern.permute.xlu1 %v622_v1 }
  0x6a   :  { %341 = vperm.xlu1 %609, %v308_v14  }
  0x6e   :  { %610 = vset.pattern.permute.xlu1 %v623_v4 }
  0x6f   :  { %369 = vperm.xlu1 %610, %v308_v14  }
  0x73   :  { %373 = vperm.xlu1 %610, %v309_v18  }
  0x77   :  { %612 = vset.pattern.permute.xlu1 %v624_v7 }
  0x78   :  { %329 = vperm.xlu1 %612, %v311_v19  }
  0x7c   :  { %613 = vset.pattern.permute.xlu1 %v622_v1 }
  0x7d   :  { %349 = vperm.xlu1 %613, %v310_v17  }
  0x81   :  { %v77_v20 = vpop.permute.xlu1 %76  ;;  %v185_v21 = vpop.permute.xlu0 %184  ;;  %614 = vset.pattern.permute.xlu1 %v623_v4 }
  0x82   :  { %377 = vperm.xlu1 %614, %v310_v17   ;;  %v111_v39 = vmul.f32 %v726_v30, %v77_v20 }
  0x85   :  { %v81_v22 = vpop.permute.xlu1 %80 }
  0x86   :  { %v129_v23 = vpop.permute.xlu0 %128  ;;  %381 = vperm.xlu1 %614, %v311_v19   ;;  %v112_v33 = vmul.f32 %v726_v30, %v81_v22 }
  0x87   :  { %v163_v41 = vmul.f32 %v737_v34, %v129_v23 }
  0x8a   :  { %v133_v24 = vpop.permute.xlu1 %132  ;;  %v137_v25 = vpop.permute.xlu0 %136  ;;  %616 = vset.pattern.permute.xlu1 %v621_v0 }
  0x8b   :  { %401 = vperm.xlu1 %616, %v309_v18   ;;  %v164_v40 = vmul.f32 %v737_v34, %v133_v24  ;;  %v165_v60 = vmul.f32 %v737_v34, %v137_v25 }
  0x8e   :  { %v720_v26 = vpop.permute.xlu0 %148 }
  0x8f   :  { %v36_v27 = vpop.permute.xlu1 %35  ;;  %405 = vperm.xlu1 %616, %v310_v17  }
  0x90   :  { %v69_v57 = vmul.f32 %v731_v31, %v36_v27 }
  0x93   :  { %v26_v28 = vpop.permute.xlu0 %25 }
  0x94   :  { %v85_v29 = vpop.permute.xlu1 %84  ;;  %v67_v37 = vmul.f32 %v731_v31, %v26_v28 }
  0x95   :  { %v113_v56 = vmul.f32 %v726_v30, %v85_v29 }
  0x96   :  { %v119_v42 = vadd.f32 %v111_v39, %v67_v37 }
  0x97   :  { %v31_v32 = vpop.permute.xlu0 %30  ;;  %v121_v61 = vadd.f32 %v113_v56, %v69_v57 }
  0x98   :  { %v68_v35 = vmul.f32 %v731_v31, %v31_v32  ;;  %v89_v36 = vpop.permute.xlu1 %88  ;;  %v171_v45 = vadd.f32 %v163_v41, %v119_v42 }
  0x99   :  { %v114_v62 = vmul.f32 %v726_v30, %v89_v36  ;;  %v173_v2 = vadd.f32 %v165_v60, %v121_v61 }
  0x9a   :  { %v120_v38 = vadd.f32 %v112_v33, %v68_v35  ;;  %v168_v35 = vmul.f32 %v737_v34, %v720_v26 }
  0x9b   :  { %v41_v55 = vpop.permute.xlu0 %40 }
  0x9c   :  { %v172_v43 = vadd.f32 %v164_v40, %v120_v38  ;;  %v70_v58 = vmul.f32 %v731_v31, %v41_v55 }
  0x9d   :  { %v141_v44 = vpop.permute.xlu1 %140 }
  0x9e   :  { %v212_v46 = vadd.f32 %v185_v21, %v172_v43  ;;  %v122_v63 = vadd.f32 %v114_v62, %v70_v58  ;;  %v166_v0 = vmul.f32 %v737_v34, %v141_v44 }
  0x9f   :  { %v56_v9 = vpop.permute.xlu0 %55 }
  0xa0   :  { %v220_v50 = vmax.f32 %v212_v46, 0.0  ;;  %v174_v4 = vadd.f32 %v166_v0, %v122_v63  ;;  %v73_v38 = vmul.f32 %v731_v31, %v56_v9 }
  0xa2   :  { %v181_v47 = vpop.permute.xlu1 %180 }
  0xa3   :  { %v211_v48 = vadd.f32 %v181_v47, %v171_v45 }
  0xa4   :  { %v93_v13 = vpop.permute.xlu0 %92 }
  0xa5   :  { %v219_v49 = vmax.f32 %v211_v48, 0.0  ;;  %v115_v16 = vmul.f32 %v726_v30, %v93_v13 }
  0xa7   :  { %v46_v51 = vpop.permute.xlu1 %45  ;;  %v561_v52 = vpack.c.bf16 %v220_v50, %v219_v49 }
  0xa8   :  { %v71_v17 = vmul.f32 %v731_v31, %v46_v51  ;;  %v105_v18 = vpop.permute.xlu0 %104 }
  0xa9   :  { %562 = vmatpush3.bf16.msra.mxu0 %v561_v52  ;;  %v118_v24 = vmul.f32 %v726_v30, %v105_v18 }
  0xaa   :  { %563 = vmatprep.subr.bf16.mxu0 %v625_v12  ;;  %v123_v22 = vadd.f32 %v115_v16, %v71_v17 }
  0xab   :  { %v51_v53 = vpop.permute.xlu1 %50 }
  0xac   :  { %v72_v23 = vmul.f32 %v731_v31, %v51_v53 }
  0xad   :  { %v197_v32 = vpop.permute.xlu0 %196 }
  0xb0   :  { %v97_v54 = vpop.permute.xlu1 %96 }
  0xb1   :  { %v116_v19 = vmul.f32 %v726_v30, %v97_v54  ;;  %v209_v43 = vpop.permute.xlu0 %208  ;;  %v629_v54 = vmov 32  }
  0xb2   :  { %617 = vset.pattern.permute.xlu1 %v629_v54  ;;  %618 = vset.pattern.permute.xlu0 %v629_v54 }
  0xb3   :  { %v124_v27 = vadd.f32 %v116_v19, %v72_v23 }
  0xb5   :  { %v145_v59 = vpop.permute.xlu1 %144  ;;  %v176_v42 = vadd.f32 %v168_v35, %v124_v27 }
  0xb6   :  { %v167_v20 = vmul.f32 %v737_v34, %v145_v59  ;;  %v315_v60 = vpop.permute.xlu0 %314 }
  0xb8   :  { %v175_v28 = vadd.f32 %v167_v20, %v123_v22 }
  0xba   :  { %v189_v1 = vpop.permute.xlu1 %188  ;;  %v215_v39 = vadd.f32 %v197_v32, %v175_v28  ;;  %v325_v62 = vpop.permute.xlu0 %324 }
  0xbb   :  { %v213_v3 = vadd.f32 %v189_v1, %v173_v2  ;;  %v332_v2 = vlaneseq }
  0xbc   :  { %v223_v47 = vmax.f32 %v215_v39, 0.0 }
  0xbd   :  { %v221_v7 = vmax.f32 %v213_v3, 0.0 }
  0xbe   :  { %v193_v5 = vpop.permute.xlu1 %192 }
  0xbf   :  { %v214_v6 = vadd.f32 %v193_v5, %v174_v4  ;;  %v346_v3 = vpop.permute.xlu0 %345  ;;  %v333_v5 = vshrl.u32 %v332_v2, 7 }
  0xc1   :  { %v222_v8 = vmax.f32 %v214_v6, 0.0  ;;  %v358_v9 = vsub.s32 1, %v333_v5 }
  0xc3   :  { %v564_v10 = vpack.c.bf16 %v222_v8, %v221_v7  ;;  %v61_v11 = vpop.permute.xlu1 %60  ;;  %v354_v6 = vpop.permute.xlu0 %353  ;;  %v334_v8 = vsub.s32 0, %v333_v5 }
  0xc4   :  { %v74_v25 = vmul.f32 %v731_v31, %v61_v11  ;;  %v11_v11 = vld [vmem:[%s789_s0] sm:$0x7] }
  0xc5   :  { %565 = vmatpush3.bf16.msra.mxu0 %v564_v10  ;;  %v386_v10 = vsub.s32 2, %v333_v5 }
  0xc6   :  { %566 = vmatprep.subr.bf16.mxu0 %v625_v12  ;;  %v126_v36 = vadd.f32 %v118_v24, %v74_v25 }
  0xc8   :  { %v101_v14 = vpop.permute.xlu1 %100  ;;  %v398_v19 = vpop.permute.xlu0 %397 }
  0xc9   :  { %v117_v37 = vmul.f32 %v726_v30, %v101_v14 }
  0xcb   :  { %v125_v45 = vadd.f32 %v117_v37, %v73_v38 }
  0xcd   :  { %v153_v21 = vpop.permute.xlu1 %152 }
  0xce   :  { %v169_v40 = vmul.f32 %v737_v34, %v153_v21 }
  0xd0   :  { %v177_v50 = vadd.f32 %v169_v40, %v125_v45 }
  0xd1   :  { %v157_v29 = vpop.permute.xlu1 %156 }
  0xd2   :  { %v170_v33 = vmul.f32 %v737_v34, %v157_v29  ;;  %v770_v34 = vld [vmem:[%s787_s1 + $0x68] sm:$0xff] }
  0xd3   :  { %423 = vperm.xlu1 %617, %v770_v34  }
  0xd4   :  { %v178_v41 = vadd.f32 %v170_v33, %v126_v36 }
  0xd6   :  { %v201_v44 = vpop.permute.xlu1 %200  ;;  %v218_v48 = vadd.f32 %v209_v43, %v178_v41  ;;  %v410_v43 = vpop.permute.xlu0 %409 }
  0xd7   :  { %v216_v46 = vadd.f32 %v201_v44, %v176_v42 }
  0xd8   :  { %v226_v53 = vmax.f32 %v218_v48, 0.0 }
  0xd9   :  { %v224_v49 = vmax.f32 %v216_v46, 0.0 }
  0xda   :  { %v205_v51 = vpop.permute.xlu1 %204 }
  0xdb   :  { %v567_v26 = vpack.c.bf16 %v224_v49, %v223_v47  ;;  %v217_v52 = vadd.f32 %v205_v51, %v177_v50 }
  0xdd   :  { %v225_v30 = vmax.f32 %v217_v52, 0.0  ;;  %568 = vmatpush3.bf16.msra.mxu0 %v567_v26 }
  0xde   :  { %569 = vmatprep.subr.bf16.mxu0 %v625_v12 }
  0xdf   :  { %v570_v31 = vpack.c.bf16 %v226_v53, %v225_v30  ;;  %v231_v55 = vpop.permute.xlu1 %230 }
  0xe1   :  { %571 = vmatpush3.bf16.msra.mxu0 %v570_v31 }
  0xe4   :  { %547 = vmatmul.mubr.msk.f32.vlgmr.msra.gmra.mrb[0].mxu0 %vm233_vm1, %v700_v15  ;;  %v320_v56 = vpop.permute.xlu1 %319 }
  0xe9   :  { %v342_v57 = vpop.permute.xlu1 %341 }
  0xee   :  { %v370_v58 = vpop.permute.xlu1 %369 }
  0xf2   :  { %v374_v59 = vpop.permute.xlu1 %373 }
  0xf7   :  { %v330_v61 = vpop.permute.xlu1 %329 }
  0xfc   :  { %v350_v63 = vpop.permute.xlu1 %349 }
 0x101   :  { %v378_v4 = vpop.permute.xlu1 %377 }
 0x105   :  { %v382_v7 = vpop.permute.xlu1 %381 }
 0x10a   :  { %v402_v20 = vpop.permute.xlu1 %401 }
 0x10e   :  { %v406_v45 = vpop.permute.xlu1 %405 }
 0x152   :  { %v424_v54 = vpop.permute.xlu1 %423 }
 0x1b7   :  { %v302_v15 = vpop.f32.mrb[0].mxu0 }
 0x1b8   :  { %v303_v0 = vadd.f32 %v302_v15, %v231_v55  ;;  %v548_v1 = vpop.f32.mrb[1].mxu0 }
 0x1ba   :  { %619 = vtanh.f32 %v303_v0 }
 0x1c4   :  { %v620_v13 = vpop.eup %619 }
 0x1c5   :  { %v307_v14 = vsub.f32 %v620_v13, %v11_v11  ;;  %505 = vst [vmem:[%s788_s2 + $0x1] sm:$0x8] %v620_v13  ;;  %v335_v16 = vrot.slane %v620_v13, %v334_v8  ;;  %v359_v17 = vrot.slane %v620_v13, %v358_v9  ;;  %v387_v18 = vrot.slane %v620_v13, %v386_v10 }
 0x1c7   :  { %504 = vst [vmem:[%s788_s2 + $0x1] sm:$0x7] %v307_v14  ;;  %v338_v21 = vmul.f32 %v335_v16, %v325_v62  ;;  %v362_v22 = vmul.f32 %v359_v17, %v350_v63  ;;  %v337_v23 = vmul.f32 %v335_v16, %v320_v56  ;;  %v361_v24 = vmul.f32 %v359_v17, %v346_v3 }
 0x1c8   :  { %v390_v25 = vmul.f32 %v387_v18, %v378_v4  ;;  %v339_v27 = vmul.f32 %v335_v16, %v330_v61  ;;  %v363_v28 = vmul.f32 %v359_v17, %v354_v6  ;;  %v336_v33 = vmul.f32 %v335_v16, %v315_v60 }
 0x1c9   :  { %v366_v29 = vadd.f32 %v362_v22, %v338_v21  ;;  %v365_v32 = vadd.f32 %v361_v24, %v337_v23  ;;  %v360_v35 = vmul.f32 %v359_v17, %v342_v57  ;;  %v391_v37 = vmul.f32 %v387_v18, %v382_v7 }
 0x1ca   :  { %v367_v36 = vadd.f32 %v363_v28, %v339_v27  ;;  %v389_v38 = vmul.f32 %v387_v18, %v374_v59  ;;  %v388_v40 = vmul.f32 %v387_v18, %v370_v58  ;;  %v500_v57 = vrot.slane %v620_v13, 3 }
 0x1cb   :  { %v364_v39 = vadd.f32 %v360_v35, %v336_v33  ;;  %v394_v41 = vadd.f32 %v390_v25, %v366_v29 }
 0x1cc   :  { %v393_v42 = vadd.f32 %v389_v38, %v365_v32  ;;  %v395_v44 = vadd.f32 %v391_v37, %v367_v36 }
 0x1cd   :  { %v392_v46 = vadd.f32 %v388_v40, %v364_v39  ;;  %v414_v50 = vadd.f32 %v406_v45, %v394_v41 }
 0x1ce   :  { %v413_v47 = vadd.f32 %v402_v20, %v393_v42  ;;  %v415_v49 = vadd.f32 %v410_v43, %v395_v44 }
 0x1cf   :  { %v412_v48 = vadd.f32 %v398_v19, %v392_v46  ;;  %v418_v53 = vmax.f32 %v414_v50, 0.0 }
 0x1d0   :  { %v417_v51 = vmax.f32 %v413_v47, 0.0  ;;  %v419_v52 = vmax.f32 %v415_v49, 0.0 }
 0x1d1   :  { %v416_v26 = vmax.f32 %v412_v48, 0.0 }
 0x1d2   :  { %v576_v31 = vpack.c.bf16 %v419_v52, %v418_v53 }
 0x1d3   :  { %v573_v30 = vpack.c.bf16 %v417_v51, %v416_v26 }
 0x1d5   :  { %574 = vmatpush3.bf16.msra.mxu1 %v573_v30 }
 0x1d6   :  { %575 = vmatprep.subr.bf16.mxu1 %v625_v12 }
 0x1d9   :  { %577 = vmatpush3.bf16.msra.mxu1 %v576_v31 }
 0x1dc   :  { %558 = vmatmul.mubr.msk.f32.vlgmr.msra.gmra.mrb[0].mxu1 %vm426_vm2, %v770_v34 }
 0x2af   :  { %v495_v55 = vpop.f32.mrb[0].mxu1 }
 0x2b0   :  { %v496_v56 = vadd.f32 %v495_v55, %v424_v54  ;;  %v559_v58 = vpop.f32.mrb[1].mxu1 }
 0x2b2   :  { %v502_v59 = vadd.f32 %v500_v57, %v496_v56 }
 0x2b4   :  { %503 = vst [vmem:[%s788_s2] sm:$0x1] %v502_v59 }

</bundles_post_ra>
